<compile_context>
chip_gen: v6e
topology: v6e:2x2x1
jax: 0.10.0
libtpu: 0.0.40
codegen_flags: <defaults>
</compile_context>

<pallas_src>
import functools

import jax
import jax.numpy as jnp
from jax import lax
from jax.experimental import pallas as pl
from jax.experimental.pallas import tpu as pltpu


def _rab_kernel(x_ref,
                ln1w_ref, ln1b_ref,
                wqkv_ref, bqkv_ref,
                wo_ref, bo_ref,
                ln2w_ref, ln2b_ref,
                wfc_ref, bfc_ref,
                wproj_ref, bproj_ref,
                o_ref,
                *, d_model: int, n_head: int, kv_tile: int, hid_tile: int):
    C = d_model
    H = n_head
    Dh = C // H
    bt, L, _ = x_ref.shape
    M = bt * L
    mm = jnp.bfloat16      # matmul operand dtype (f32 accumulation on the MXU)

    x = x_ref[...].astype(jnp.float32).reshape(M, C)          # (M, C)

    def layernorm(v, w, b):
        mu = jnp.mean(v, axis=-1, keepdims=True)
        var = jnp.mean((v - mu) * (v - mu), axis=-1, keepdims=True)
        return (v - mu) * lax.rsqrt(var + 1e-5) * w + b

    # ---- attention branch -------------------------------------------------
    x1 = layernorm(x, ln1w_ref[0], ln1b_ref[0])                # (M, C), f32

    # wqkv pre-transposed to (C, 3C): plain (M,C)@(C,3C) MXU matmul.
    qkv = jnp.dot(x1.astype(mm), wqkv_ref[...],
                  preferred_element_type=jnp.float32) + bqkv_ref[0]    # (M, 3C)

    # Fold 1/sqrt(Dh) into q: touches M*C elements instead of H*L*kv scores.
    scale = 1.0 / float(Dh) ** 0.5
    wo = wo_ref[...]                                           # (C, C) bf16

    # Flash-style attention: per batch element, per head, walk K/V in
    # kv_tile-row chunks with an online-softmax (m, l, acc) running state.
    # Head slices come straight off the (L, 3C) qkv slab (head-major column
    # order), so no (L,H,Dh) reshape / batch-dim transpose ever materializes.
    attn_rows = []
    for bi in range(bt):                                       # static unroll
        qkv_b = qkv[bi * L:(bi + 1) * L, :]                    # (L, 3C)
        out_b = jnp.zeros((L, C), jnp.float32)
        for h in range(H):                                     # static unroll
            q_h = (qkv_b[:, h * Dh:(h + 1) * Dh] * scale).astype(mm)      # (L,Dh)
            k_h = qkv_b[:, C + h * Dh:C + (h + 1) * Dh].astype(mm)        # (L,Dh)
            v_h = qkv_b[:, 2 * C + h * Dh:2 * C + (h + 1) * Dh].astype(mm)

            m_i = l_i = acc = None
            for t0 in range(0, L, kv_tile):                    # static unroll
                t1 = min(L, t0 + kv_tile)
                k_t = k_h[t0:t1, :]                            # (Tk, Dh)
                v_t = v_h[t0:t1, :]
                s = lax.dot_general(q_h, k_t, (((1,), (1,)), ((), ())),
                                    preferred_element_type=jnp.float32)   # (L,Tk)
                s_max = jnp.max(s, axis=-1, keepdims=True)
                if m_i is None:                                # first tile init
                    m_i = s_max
                    p = jnp.exp(s - m_i)
                    l_i = jnp.sum(p, axis=-1, keepdims=True)
                    acc = jnp.dot(p.astype(mm), v_t,
                                  preferred_element_type=jnp.float32)
                else:                                          # online update
                    m_new = jnp.maximum(m_i, s_max)
                    alpha = jnp.exp(m_i - m_new)
                    p = jnp.exp(s - m_new)
                    l_i = alpha * l_i + jnp.sum(p, axis=-1, keepdims=True)
                    acc = alpha * acc + jnp.dot(p.astype(mm), v_t,
                                                preferred_element_type=jnp.float32)
                    m_i = m_new

            # Exact normalization (review: approx reciprocal made rows not sum
            # to exactly 1); this is only an (L, Dh) divide, negligible cost.
            ctx_h = (acc / l_i).astype(mm)                     # (L, Dh)
            # Per-head out-projection accumulation: ctx_h @ W_out^T[hDh:(h+1)Dh].
            out_b = out_b + jnp.dot(ctx_h, wo[h * Dh:(h + 1) * Dh, :],
                                    preferred_element_type=jnp.float32)
        attn_rows.append(out_b)

    attn_out = jnp.concatenate(attn_rows, axis=0) + bo_ref[0]  # (M, C)
    x = x + attn_out

    # ---- MLP branch (tiled over the 4C hidden axis) ------------------------
    x2 = layernorm(x, ln2w_ref[0], ln2b_ref[0]).astype(mm)     # (M, C) bf16
    n_hid = 4 * C
    mlp_acc = jnp.zeros((M, C), jnp.float32)
    for t0 in range(0, n_hid, hid_tile):                       # static unroll
        t1 = min(n_hid, t0 + hid_tile)
        h = jnp.dot(x2, wfc_ref[:, t0:t1],
                    preferred_element_type=jnp.float32) + bfc_ref[0, t0:t1]
        # QuickGELU.  TODO(synk): on v6e/v7x this elementwise pass could run in
        # bf16 (bf16 VPU) to halve vreg footprint; kept f32 for v5e safety.
        g = (h * jax.nn.sigmoid(1.702 * h)).astype(mm)
        mlp_acc = mlp_acc + jnp.dot(g, wproj_ref[t0:t1, :],
                                    preferred_element_type=jnp.float32)

    o_ref[...] = (x + mlp_acc + bproj_ref[0]).reshape(bt, L, C).astype(o_ref.dtype)


def residual_attention_block(x_lbc, params, n_head):
    """x_lbc: (L, B, C).  params: dict of weights (see init_params below)."""
    L, B, C = x_lbc.shape
    in_dtype = x_lbc.dtype
    mm = jnp.bfloat16

    # Keep activations in their original dtype (halves HBM traffic for bf16
    # inputs); relayout to (B, L, C) so each grid step DMAs contiguous
    # (bt, L, C) tiles.
    x = jnp.transpose(x_lbc, (1, 0, 2))

    # Pre-transpose the large weight matrices once (no per-step in-kernel .T
    # relayout) and cast them to bf16 (halves the resident weight slab and its
    # HBM traffic).  LayerNorm params and biases stay f32.
    # TODO(synk): on v5e, int8 weight quantization of fc/proj would halve the
    # weight-bandwidth bound further (v7x MXU has no int8 path).
    weight_args = [
        params['ln1_w'], params['ln1_b'],
        jnp.transpose(params['in_proj_w']).astype(mm),    # (C, 3C)
        params['in_proj_b'],
        jnp.transpose(params['out_proj_w']).astype(mm),   # (C, C)
        params['out_proj_b'],
        params['ln2_w'], params['ln2_b'],
        jnp.transpose(params['fc_w']).astype(mm),         # (C, 4C)
        params['fc_b'],
        jnp.transpose(params['proj_w']).astype(mm),       # (4C, C)
        params['proj_b'],
    ]

    def weight_spec(arr):
        # Constant index_map -> fetched once across the grid.  Single-buffer
        # so the weight slab is not double-buffered (critical on v7x 64 MiB).
        nd = arr.ndim
        idx = lambda b, _nd=nd: (0,) * _nd
        try:
            return pl.BlockSpec(arr.shape, idx, pipeline_mode=pl.Buffered(1))
        except TypeError:
            # Older jax without pipeline_mode: falls back to the default
            # double-buffered weight slab (covered by the device-aware
            # vmem_limit below, but wasteful on 64 MiB parts).
            return pl.BlockSpec(arr.shape, idx)

    # --- device-aware VMEM budgeting ----------------------------------------
    try:
        vmem_cap = int(pltpu.get_tpu_info().vmem_capacity_bytes)
    except Exception:
        vmem_cap = 64 << 20   # conservative fallback (v7x per-core size)
    cap = max(vmem_cap - (8 << 20), 16 << 20)   # leave ~8 MiB headroom

    # Tiling parameters.
    kv_tile = min(256, L)
    n_hid = 4 * C
    hid_tile = next((t for t in (1024, 512, 256, 128)
                     if t <= n_hid and n_hid % t == 0), n_hid)

    weight_bytes = sum(int(w.size) * w.dtype.itemsize for w in weight_args)

    def vmem_estimate(bt):
        io_bytes = 4 * bt * L * C * jnp.dtype(in_dtype).itemsize  # dbl-buffered io
        f32_tmp = 4 * bt * L * (12 * C + hid_tile)                # x/x1/qkv/accs/h
        attn_tmp = 4 * L * kv_tile * 4                            # per-head s/p/acc
        return int(1.5 * (weight_bytes + io_bytes + f32_tmp + attn_tmp))

    # Multi-batch blocking: amortize per-step overhead and feed the MXU a
    # larger M on 128 MiB parts (v5e/v6e); keep bt=1 on small-VMEM parts (v7x).
    bt = 1
    if vmem_cap > (96 << 20):
        for cand in (4, 2):
            if B % cand == 0 and vmem_estimate(cand) <= cap:
                bt = cand
                break

    vmem_limit = min(max(vmem_estimate(bt), 32 << 20), cap)

    kernel = functools.partial(_rab_kernel, d_model=C, n_head=n_head,
                               kv_tile=kv_tile, hid_tile=hid_tile)

    # TODO(synk): hide the first-step weight DMA by moving fc/proj weights to
    # memory_space=pl.ANY and issuing a manual make_async_copy that completes
    # just before the MLP phase (or prefetch next-layer weights cross-call).
    out = pl.pallas_call(
        kernel,
        out_shape=jax.ShapeDtypeStruct((B, L, C), in_dtype),
        grid_spec=pltpu.PrefetchScalarGridSpec(
            num_scalar_prefetch=0,
            grid=(B // bt,),
            in_specs=[pl.BlockSpec((bt, L, C), lambda b: (b, 0, 0))]
                     + [weight_spec(w) for w in weight_args],
            out_specs=pl.BlockSpec((bt, L, C), lambda b: (b, 0, 0)),
        ),
        compiler_params=pltpu.CompilerParams(
            dimension_semantics=("parallel",),
            vmem_limit_bytes=vmem_limit),
    )(x, *weight_args)

    # TODO(synk): on v7x with B == 1 add a second "parallel" grid axis over
    # q-row tiles (staging K/V per tile) so both TensorCores get work.
    return jnp.transpose(out, (1, 0, 2))


def init_params(key, d_model):
    """Deterministic synthetic parameter init (shapes match the nn modules)."""
    C = d_model
    ks = jax.random.split(key, 6)
    s = 0.02
    return {
        'ln1_w': jnp.ones((1, C), jnp.float32),
        'ln1_b': jnp.zeros((1, C), jnp.float32),
        'in_proj_w': s * jax.random.normal(ks[0], (3 * C, C), jnp.float32),
        'in_proj_b': s * jax.random.normal(ks[1], (1, 3 * C), jnp.float32),
        'out_proj_w': s * jax.random.normal(ks[2], (C, C), jnp.float32),
        'out_proj_b': jnp.zeros((1, C), jnp.float32),
        'ln2_w': jnp.ones((1, C), jnp.float32),
        'ln2_b': jnp.zeros((1, C), jnp.float32),
        'fc_w': s * jax.random.normal(ks[3], (4 * C, C), jnp.float32),
        'fc_b': s * jax.random.normal(ks[4], (1, 4 * C), jnp.float32),
        'proj_w': s * jax.random.normal(ks[5], (C, 4 * C), jnp.float32),
        'proj_b': jnp.zeros((1, C), jnp.float32),
    }


def reference_jax(x_lbc, params, n_head):
    """Pure-JAX reference mirroring torch semantics (for verification)."""
    L, B, C = x_lbc.shape
    H, Dh = n_head, C // n_head
    x = x_lbc.astype(jnp.float32)

    def ln(v, w, b):
        mu = jnp.mean(v, -1, keepdims=True)
        var = jnp.mean((v - mu) ** 2, -1, keepdims=True)
        return (v - mu) / jnp.sqrt(var + 1e-5) * w[0] + b[0]

    x1 = ln(x, params['ln1_w'], params['ln1_b'])
    qkv = x1 @ params['in_proj_w'].T + params['in_proj_b'][0]
    q, k, v = jnp.split(qkv, 3, axis=-1)
    q = q.reshape(L, B, H, Dh)
    k = k.reshape(L, B, H, Dh)
    v = v.reshape(L, B, H, Dh)
    sc = jnp.einsum('qbhd,kbhd->bhqk', q, k) / jnp.sqrt(jnp.float32(Dh))
    p = jax.nn.softmax(sc, axis=-1)
    ctx = jnp.einsum('bhqk,kbhd->qbhd', p, v).reshape(L, B, C)
    attn_out = ctx @ params['out_proj_w'].T + params['out_proj_b'][0]
    x = x + attn_out

    x2 = ln(x, params['ln2_w'], params['ln2_b'])
    h = x2 @ params['fc_w'].T + params['fc_b'][0]
    h = h * jax.nn.sigmoid(1.702 * h)
    x = x + (h @ params['proj_w'].T + params['proj_b'][0])
    return x.astype(x_lbc.dtype)


if __name__ == "__main__":
    L, B, C, H = 8, 2, 32, 4
    key = jax.random.PRNGKey(0)
    kx, kp = jax.random.split(key)
    x = jax.random.normal(kx, (L, B, C), jnp.float32)
    params = init_params(kp, C)

    out = residual_attention_block(x, params, H)
    out = jax.block_until_ready(out)

    ref = reference_jax(x, params, H)
    assert out.shape == (L, B, C)
    # bf16 matmul operands -> slightly looser tolerance than pure f32.
    assert jnp.allclose(out, ref, rtol=2e-2, atol=2e-2), "mismatch vs reference"
    print("KERNEL_OK")
</pallas_src>

<mosaic_0001>
module attributes {stable_mosaic.version = 11 : i64} {
  func.func @_rab_kernel(%arg0: i32, %arg1: memref<1x8x32xf32, #tpu.memory_space<vmem>>, %arg2: memref<1x32xf32, #tpu.memory_space<vmem>>, %arg3: memref<1x32xf32, #tpu.memory_space<vmem>>, %arg4: memref<32x96xbf16, #tpu.memory_space<vmem>>, %arg5: memref<1x96xf32, #tpu.memory_space<vmem>>, %arg6: memref<32x32xbf16, #tpu.memory_space<vmem>>, %arg7: memref<1x32xf32, #tpu.memory_space<vmem>>, %arg8: memref<1x32xf32, #tpu.memory_space<vmem>>, %arg9: memref<1x32xf32, #tpu.memory_space<vmem>>, %arg10: memref<32x128xbf16, #tpu.memory_space<vmem>>, %arg11: memref<1x128xf32, #tpu.memory_space<vmem>>, %arg12: memref<128x32xbf16, #tpu.memory_space<vmem>>, %arg13: memref<1x32xf32, #tpu.memory_space<vmem>>, %arg14: memref<1x8x32xf32, #tpu.memory_space<vmem>>) attributes {dimension_semantics = [#tpu.dimension_semantics<parallel>], iteration_bounds = array<i64: 2>, scalar_prefetch = 0 : i64, scratch_operands = 0 : i64, tpu.core_type = #tpu.core_type<tc>, window_params = [{transform_indices = @transform_0, window_bounds = array<i64: 1, 8, 32>}, {pipeline_mode = #tpu.pipeline_mode<synchronous>, transform_indices = @transform_1, window_bounds = array<i64: 1, 32>}, {pipeline_mode = #tpu.pipeline_mode<synchronous>, transform_indices = @transform_2, window_bounds = array<i64: 1, 32>}, {pipeline_mode = #tpu.pipeline_mode<synchronous>, transform_indices = @transform_3, window_bounds = array<i64: 32, 96>}, {pipeline_mode = #tpu.pipeline_mode<synchronous>, transform_indices = @transform_4, window_bounds = array<i64: 1, 96>}, {pipeline_mode = #tpu.pipeline_mode<synchronous>, transform_indices = @transform_5, window_bounds = array<i64: 32, 32>}, {pipeline_mode = #tpu.pipeline_mode<synchronous>, transform_indices = @transform_6, window_bounds = array<i64: 1, 32>}, {pipeline_mode = #tpu.pipeline_mode<synchronous>, transform_indices = @transform_7, window_bounds = array<i64: 1, 32>}, {pipeline_mode = #tpu.pipeline_mode<synchronous>, transform_indices = @transform_8, window_bounds = array<i64: 1, 32>}, {pipeline_mode = #tpu.pipeline_mode<synchronous>, transform_indices = @transform_9, window_bounds = array<i64: 32, 128>}, {pipeline_mode = #tpu.pipeline_mode<synchronous>, transform_indices = @transform_10, window_bounds = array<i64: 1, 128>}, {pipeline_mode = #tpu.pipeline_mode<synchronous>, transform_indices = @transform_11, window_bounds = array<i64: 128, 32>}, {pipeline_mode = #tpu.pipeline_mode<synchronous>, transform_indices = @transform_12, window_bounds = array<i64: 1, 32>}, {transform_indices = @transform_13, window_bounds = array<i64: 1, 8, 32>}]} {
    %c0 = arith.constant 0 : index
    %c0_0 = arith.constant 0 : index
    %c0_1 = arith.constant 0 : index
    %0 = vector.load %arg1[%c0, %c0_0, %c0_1] : memref<1x8x32xf32, #tpu.memory_space<vmem>>, vector<1x8x32xf32>
    %1 = vector.shape_cast %0 : vector<1x8x32xf32> to vector<8x32xf32>
    %c0_2 = arith.constant 0 : index
    %c0_3 = arith.constant 0 : index
    %2 = vector.load %arg2[%c0_2, %c0_3] : memref<1x32xf32, #tpu.memory_space<vmem>>, vector<1x32xf32>
    %3 = vector.shape_cast %2 : vector<1x32xf32> to vector<32xf32>
    %c0_4 = arith.constant 0 : index
    %c0_5 = arith.constant 0 : index
    %4 = vector.load %arg3[%c0_4, %c0_5] : memref<1x32xf32, #tpu.memory_space<vmem>>, vector<1x32xf32>
    %5 = vector.shape_cast %4 : vector<1x32xf32> to vector<32xf32>
    %cst = arith.constant dense<0.000000e+00> : vector<8xf32>
    %6 = vector.multi_reduction <add>, %1, %cst [1] : vector<8x32xf32> to vector<8xf32>
    %7 = vector.shape_cast %6 : vector<8xf32> to vector<8x1xf32>
    %cst_6 = arith.constant 3.200000e+01 : f32
    %8 = vector.broadcast %cst_6 : f32 to vector<8x1xf32>
    %9 = arith.divf %7, %8 : vector<8x1xf32>
    %10 = vector.broadcast %9 : vector<8x1xf32> to vector<8x32xf32>
    %11 = arith.subf %1, %10 : vector<8x32xf32>
    %12 = vector.broadcast %9 : vector<8x1xf32> to vector<8x32xf32>
    %13 = arith.subf %1, %12 : vector<8x32xf32>
    %14 = arith.mulf %11, %13 : vector<8x32xf32>
    %cst_7 = arith.constant dense<0.000000e+00> : vector<8xf32>
    %15 = vector.multi_reduction <add>, %14, %cst_7 [1] : vector<8x32xf32> to vector<8xf32>
    %16 = vector.shape_cast %15 : vector<8xf32> to vector<8x1xf32>
    %cst_8 = arith.constant 3.200000e+01 : f32
    %17 = vector.broadcast %cst_8 : f32 to vector<8x1xf32>
    %18 = arith.divf %16, %17 : vector<8x1xf32>
    %19 = vector.broadcast %9 : vector<8x1xf32> to vector<8x32xf32>
    %20 = arith.subf %1, %19 : vector<8x32xf32>
    %cst_9 = arith.constant 9.99999974E-6 : f32
    %21 = vector.broadcast %cst_9 : f32 to vector<8x1xf32>
    %22 = arith.addf %18, %21 : vector<8x1xf32>
    %23 = math.rsqrt %22 : vector<8x1xf32>
    %24 = vector.broadcast %23 : vector<8x1xf32> to vector<8x32xf32>
    %25 = arith.mulf %20, %24 : vector<8x32xf32>
    %26 = vector.shape_cast %3 : vector<32xf32> to vector<1x32xf32>
    %27 = vector.broadcast %26 : vector<1x32xf32> to vector<8x32xf32>
    %28 = arith.mulf %25, %27 : vector<8x32xf32>
    %29 = vector.shape_cast %5 : vector<32xf32> to vector<1x32xf32>
    %30 = vector.broadcast %29 : vector<1x32xf32> to vector<8x32xf32>
    %31 = arith.addf %28, %30 : vector<8x32xf32>
    %32 = arith.truncf %31 : vector<8x32xf32> to vector<8x32xbf16>
    %c0_10 = arith.constant 0 : index
    %c0_11 = arith.constant 0 : index
    %33 = vector.load %arg4[%c0_10, %c0_11] : memref<32x96xbf16, #tpu.memory_space<vmem>>, vector<32x96xbf16>
    %cst_12 = arith.constant dense<0.000000e+00> : vector<8x96xf32>
    %34 = tpu.matmul %32, %33, %cst_12 {dimension_numbers = #tpu.dot_dimension_numbers<[1], [0], [0], [1], [0, 0, 1, 1], [], []>} : vector<8x32xbf16>, vector<32x96xbf16>, vector<8x96xf32> -> vector<8x96xf32>
    %c0_13 = arith.constant 0 : index
    %c0_14 = arith.constant 0 : index
    %35 = vector.load %arg5[%c0_13, %c0_14] : memref<1x96xf32, #tpu.memory_space<vmem>>, vector<1x96xf32>
    %36 = vector.shape_cast %35 : vector<1x96xf32> to vector<96xf32>
    %37 = vector.shape_cast %36 : vector<96xf32> to vector<1x96xf32>
    %38 = vector.broadcast %37 : vector<1x96xf32> to vector<8x96xf32>
    %39 = arith.addf %34, %38 : vector<8x96xf32>
    %c0_15 = arith.constant 0 : index
    %c0_16 = arith.constant 0 : index
    %40 = vector.load %arg6[%c0_15, %c0_16] : memref<32x32xbf16, #tpu.memory_space<vmem>>, vector<32x32xbf16>
    %cst_17 = arith.constant 0.000000e+00 : f32
    %41 = vector.broadcast %cst_17 : f32 to vector<8x32xf32>
    %42 = vector.extract_strided_slice %39 {offsets = [0, 0], sizes = [8, 8], strides = [1, 1]} : vector<8x96xf32> to vector<8x8xf32>
    %cst_18 = arith.constant 0.353553385 : f32
    %43 = vector.broadcast %cst_18 : f32 to vector<8x8xf32>
    %44 = arith.mulf %42, %43 : vector<8x8xf32>
    %45 = arith.truncf %44 : vector<8x8xf32> to vector<8x8xbf16>
    %46 = vector.extract_strided_slice %39 {offsets = [0, 32], sizes = [8, 8], strides = [1, 1]} : vector<8x96xf32> to vector<8x8xf32>
    %47 = arith.truncf %46 : vector<8x8xf32> to vector<8x8xbf16>
    %48 = vector.extract_strided_slice %39 {offsets = [0, 64], sizes = [8, 8], strides = [1, 1]} : vector<8x96xf32> to vector<8x8xf32>
    %49 = arith.truncf %48 : vector<8x8xf32> to vector<8x8xbf16>
    %cst_19 = arith.constant dense<0.000000e+00> : vector<8x8xf32>
    %50 = tpu.matmul %45, %47, %cst_19 {dimension_numbers = #tpu.dot_dimension_numbers<[1], [1], [0], [0], [0, 0, 1, 0], [], []>} : vector<8x8xbf16>, vector<8x8xbf16>, vector<8x8xf32> -> vector<8x8xf32>
    %cst_20 = arith.constant dense<0xFF800000> : vector<8xf32>
    %51 = vector.multi_reduction <maximumf>, %50, %cst_20 [1] : vector<8x8xf32> to vector<8xf32>
    %52 = vector.shape_cast %51 : vector<8xf32> to vector<8x1xf32>
    %53 = vector.broadcast %52 : vector<8x1xf32> to vector<8x8xf32>
    %54 = arith.subf %50, %53 : vector<8x8xf32>
    %55 = math.exp %54 : vector<8x8xf32>
    %cst_21 = arith.constant dense<0.000000e+00> : vector<8xf32>
    %56 = vector.multi_reduction <add>, %55, %cst_21 [1] : vector<8x8xf32> to vector<8xf32>
    %57 = vector.shape_cast %56 : vector<8xf32> to vector<8x1xf32>
    %58 = arith.truncf %55 : vector<8x8xf32> to vector<8x8xbf16>
    %cst_22 = arith.constant dense<0.000000e+00> : vector<8x8xf32>
    %59 = tpu.matmul %58, %49, %cst_22 {dimension_numbers = #tpu.dot_dimension_numbers<[1], [0], [0], [1], [0, 0, 1, 1], [], []>} : vector<8x8xbf16>, vector<8x8xbf16>, vector<8x8xf32> -> vector<8x8xf32>
    %60 = vector.broadcast %57 : vector<8x1xf32> to vector<8x8xf32>
    %61 = arith.divf %59, %60 : vector<8x8xf32>
    %62 = arith.truncf %61 : vector<8x8xf32> to vector<8x8xbf16>
    %63 = vector.extract_strided_slice %40 {offsets = [0, 0], sizes = [8, 32], strides = [1, 1]} : vector<32x32xbf16> to vector<8x32xbf16>
    %cst_23 = arith.constant dense<0.000000e+00> : vector<8x32xf32>
    %64 = tpu.matmul %62, %63, %cst_23 {dimension_numbers = #tpu.dot_dimension_numbers<[1], [0], [0], [1], [0, 0, 1, 1], [], []>} : vector<8x8xbf16>, vector<8x32xbf16>, vector<8x32xf32> -> vector<8x32xf32>
    %65 = arith.addf %41, %64 : vector<8x32xf32>
    %66 = vector.extract_strided_slice %39 {offsets = [0, 8], sizes = [8, 8], strides = [1, 1]} : vector<8x96xf32> to vector<8x8xf32>
    %cst_24 = arith.constant 0.353553385 : f32
    %67 = vector.broadcast %cst_24 : f32 to vector<8x8xf32>
    %68 = arith.mulf %66, %67 : vector<8x8xf32>
    %69 = arith.truncf %68 : vector<8x8xf32> to vector<8x8xbf16>
    %70 = vector.extract_strided_slice %39 {offsets = [0, 40], sizes = [8, 8], strides = [1, 1]} : vector<8x96xf32> to vector<8x8xf32>
    %71 = arith.truncf %70 : vector<8x8xf32> to vector<8x8xbf16>
    %72 = vector.extract_strided_slice %39 {offsets = [0, 72], sizes = [8, 8], strides = [1, 1]} : vector<8x96xf32> to vector<8x8xf32>
    %73 = arith.truncf %72 : vector<8x8xf32> to vector<8x8xbf16>
    %cst_25 = arith.constant dense<0.000000e+00> : vector<8x8xf32>
    %74 = tpu.matmul %69, %71, %cst_25 {dimension_numbers = #tpu.dot_dimension_numbers<[1], [1], [0], [0], [0, 0, 1, 0], [], []>} : vector<8x8xbf16>, vector<8x8xbf16>, vector<8x8xf32> -> vector<8x8xf32>
    %cst_26 = arith.constant dense<0xFF800000> : vector<8xf32>
    %75 = vector.multi_reduction <maximumf>, %74, %cst_26 [1] : vector<8x8xf32> to vector<8xf32>
    %76 = vector.shape_cast %75 : vector<8xf32> to vector<8x1xf32>
    %77 = vector.broadcast %76 : vector<8x1xf32> to vector<8x8xf32>
    %78 = arith.subf %74, %77 : vector<8x8xf32>
    %79 = math.exp %78 : vector<8x8xf32>
    %cst_27 = arith.constant dense<0.000000e+00> : vector<8xf32>
    %80 = vector.multi_reduction <add>, %79, %cst_27 [1] : vector<8x8xf32> to vector<8xf32>
    %81 = vector.shape_cast %80 : vector<8xf32> to vector<8x1xf32>
    %82 = arith.truncf %79 : vector<8x8xf32> to vector<8x8xbf16>
    %cst_28 = arith.constant dense<0.000000e+00> : vector<8x8xf32>
    %83 = tpu.matmul %82, %73, %cst_28 {dimension_numbers = #tpu.dot_dimension_numbers<[1], [0], [0], [1], [0, 0, 1, 1], [], []>} : vector<8x8xbf16>, vector<8x8xbf16>, vector<8x8xf32> -> vector<8x8xf32>
    %84 = vector.broadcast %81 : vector<8x1xf32> to vector<8x8xf32>
    %85 = arith.divf %83, %84 : vector<8x8xf32>
    %86 = arith.truncf %85 : vector<8x8xf32> to vector<8x8xbf16>
    %87 = vector.extract_strided_slice %40 {offsets = [8, 0], sizes = [8, 32], strides = [1, 1]} : vector<32x32xbf16> to vector<8x32xbf16>
    %cst_29 = arith.constant dense<0.000000e+00> : vector<8x32xf32>
    %88 = tpu.matmul %86, %87, %cst_29 {dimension_numbers = #tpu.dot_dimension_numbers<[1], [0], [0], [1], [0, 0, 1, 1], [], []>} : vector<8x8xbf16>, vector<8x32xbf16>, vector<8x32xf32> -> vector<8x32xf32>
    %89 = arith.addf %65, %88 : vector<8x32xf32>
    %90 = vector.extract_strided_slice %39 {offsets = [0, 16], sizes = [8, 8], strides = [1, 1]} : vector<8x96xf32> to vector<8x8xf32>
    %cst_30 = arith.constant 0.353553385 : f32
    %91 = vector.broadcast %cst_30 : f32 to vector<8x8xf32>
    %92 = arith.mulf %90, %91 : vector<8x8xf32>
    %93 = arith.truncf %92 : vector<8x8xf32> to vector<8x8xbf16>
    %94 = vector.extract_strided_slice %39 {offsets = [0, 48], sizes = [8, 8], strides = [1, 1]} : vector<8x96xf32> to vector<8x8xf32>
    %95 = arith.truncf %94 : vector<8x8xf32> to vector<8x8xbf16>
    %96 = vector.extract_strided_slice %39 {offsets = [0, 80], sizes = [8, 8], strides = [1, 1]} : vector<8x96xf32> to vector<8x8xf32>
    %97 = arith.truncf %96 : vector<8x8xf32> to vector<8x8xbf16>
    %cst_31 = arith.constant dense<0.000000e+00> : vector<8x8xf32>
    %98 = tpu.matmul %93, %95, %cst_31 {dimension_numbers = #tpu.dot_dimension_numbers<[1], [1], [0], [0], [0, 0, 1, 0], [], []>} : vector<8x8xbf16>, vector<8x8xbf16>, vector<8x8xf32> -> vector<8x8xf32>
    %cst_32 = arith.constant dense<0xFF800000> : vector<8xf32>
    %99 = vector.multi_reduction <maximumf>, %98, %cst_32 [1] : vector<8x8xf32> to vector<8xf32>
    %100 = vector.shape_cast %99 : vector<8xf32> to vector<8x1xf32>
    %101 = vector.broadcast %100 : vector<8x1xf32> to vector<8x8xf32>
    %102 = arith.subf %98, %101 : vector<8x8xf32>
    %103 = math.exp %102 : vector<8x8xf32>
    %cst_33 = arith.constant dense<0.000000e+00> : vector<8xf32>
    %104 = vector.multi_reduction <add>, %103, %cst_33 [1] : vector<8x8xf32> to vector<8xf32>
    %105 = vector.shape_cast %104 : vector<8xf32> to vector<8x1xf32>
    %106 = arith.truncf %103 : vector<8x8xf32> to vector<8x8xbf16>
    %cst_34 = arith.constant dense<0.000000e+00> : vector<8x8xf32>
    %107 = tpu.matmul %106, %97, %cst_34 {dimension_numbers = #tpu.dot_dimension_numbers<[1], [0], [0], [1], [0, 0, 1, 1], [], []>} : vector<8x8xbf16>, vector<8x8xbf16>, vector<8x8xf32> -> vector<8x8xf32>
    %108 = vector.broadcast %105 : vector<8x1xf32> to vector<8x8xf32>
    %109 = arith.divf %107, %108 : vector<8x8xf32>
    %110 = arith.truncf %109 : vector<8x8xf32> to vector<8x8xbf16>
    %111 = vector.extract_strided_slice %40 {offsets = [16, 0], sizes = [8, 32], strides = [1, 1]} : vector<32x32xbf16> to vector<8x32xbf16>
    %cst_35 = arith.constant dense<0.000000e+00> : vector<8x32xf32>
    %112 = tpu.matmul %110, %111, %cst_35 {dimension_numbers = #tpu.dot_dimension_numbers<[1], [0], [0], [1], [0, 0, 1, 1], [], []>} : vector<8x8xbf16>, vector<8x32xbf16>, vector<8x32xf32> -> vector<8x32xf32>
    %113 = arith.addf %89, %112 : vector<8x32xf32>
    %114 = vector.extract_strided_slice %39 {offsets = [0, 24], sizes = [8, 8], strides = [1, 1]} : vector<8x96xf32> to vector<8x8xf32>
    %cst_36 = arith.constant 0.353553385 : f32
    %115 = vector.broadcast %cst_36 : f32 to vector<8x8xf32>
    %116 = arith.mulf %114, %115 : vector<8x8xf32>
    %117 = arith.truncf %116 : vector<8x8xf32> to vector<8x8xbf16>
    %118 = vector.extract_strided_slice %39 {offsets = [0, 56], sizes = [8, 8], strides = [1, 1]} : vector<8x96xf32> to vector<8x8xf32>
    %119 = arith.truncf %118 : vector<8x8xf32> to vector<8x8xbf16>
    %120 = vector.extract_strided_slice %39 {offsets = [0, 88], sizes = [8, 8], strides = [1, 1]} : vector<8x96xf32> to vector<8x8xf32>
    %121 = arith.truncf %120 : vector<8x8xf32> to vector<8x8xbf16>
    %cst_37 = arith.constant dense<0.000000e+00> : vector<8x8xf32>
    %122 = tpu.matmul %117, %119, %cst_37 {dimension_numbers = #tpu.dot_dimension_numbers<[1], [1], [0], [0], [0, 0, 1, 0], [], []>} : vector<8x8xbf16>, vector<8x8xbf16>, vector<8x8xf32> -> vector<8x8xf32>
    %cst_38 = arith.constant dense<0xFF800000> : vector<8xf32>
    %123 = vector.multi_reduction <maximumf>, %122, %cst_38 [1] : vector<8x8xf32> to vector<8xf32>
    %124 = vector.shape_cast %123 : vector<8xf32> to vector<8x1xf32>
    %125 = vector.broadcast %124 : vector<8x1xf32> to vector<8x8xf32>
    %126 = arith.subf %122, %125 : vector<8x8xf32>
    %127 = math.exp %126 : vector<8x8xf32>
    %cst_39 = arith.constant dense<0.000000e+00> : vector<8xf32>
    %128 = vector.multi_reduction <add>, %127, %cst_39 [1] : vector<8x8xf32> to vector<8xf32>
    %129 = vector.shape_cast %128 : vector<8xf32> to vector<8x1xf32>
    %130 = arith.truncf %127 : vector<8x8xf32> to vector<8x8xbf16>
    %cst_40 = arith.constant dense<0.000000e+00> : vector<8x8xf32>
    %131 = tpu.matmul %130, %121, %cst_40 {dimension_numbers = #tpu.dot_dimension_numbers<[1], [0], [0], [1], [0, 0, 1, 1], [], []>} : vector<8x8xbf16>, vector<8x8xbf16>, vector<8x8xf32> -> vector<8x8xf32>
    %132 = vector.broadcast %129 : vector<8x1xf32> to vector<8x8xf32>
    %133 = arith.divf %131, %132 : vector<8x8xf32>
    %134 = arith.truncf %133 : vector<8x8xf32> to vector<8x8xbf16>
    %135 = vector.extract_strided_slice %40 {offsets = [24, 0], sizes = [8, 32], strides = [1, 1]} : vector<32x32xbf16> to vector<8x32xbf16>
    %cst_41 = arith.constant dense<0.000000e+00> : vector<8x32xf32>
    %136 = tpu.matmul %134, %135, %cst_41 {dimension_numbers = #tpu.dot_dimension_numbers<[1], [0], [0], [1], [0, 0, 1, 1], [], []>} : vector<8x8xbf16>, vector<8x32xbf16>, vector<8x32xf32> -> vector<8x32xf32>
    %137 = arith.addf %113, %136 : vector<8x32xf32>
    %c0_42 = arith.constant 0 : index
    %c0_43 = arith.constant 0 : index
    %138 = vector.load %arg7[%c0_42, %c0_43] : memref<1x32xf32, #tpu.memory_space<vmem>>, vector<1x32xf32>
    %139 = vector.shape_cast %138 : vector<1x32xf32> to vector<32xf32>
    %140 = vector.shape_cast %139 : vector<32xf32> to vector<1x32xf32>
    %141 = vector.broadcast %140 : vector<1x32xf32> to vector<8x32xf32>
    %142 = arith.addf %137, %141 : vector<8x32xf32>
    %143 = arith.addf %1, %142 : vector<8x32xf32>
    %c0_44 = arith.constant 0 : index
    %c0_45 = arith.constant 0 : index
    %144 = vector.load %arg8[%c0_44, %c0_45] : memref<1x32xf32, #tpu.memory_space<vmem>>, vector<1x32xf32>
    %145 = vector.shape_cast %144 : vector<1x32xf32> to vector<32xf32>
    %c0_46 = arith.constant 0 : index
    %c0_47 = arith.constant 0 : index
    %146 = vector.load %arg9[%c0_46, %c0_47] : memref<1x32xf32, #tpu.memory_space<vmem>>, vector<1x32xf32>
    %147 = vector.shape_cast %146 : vector<1x32xf32> to vector<32xf32>
    %cst_48 = arith.constant dense<0.000000e+00> : vector<8xf32>
    %148 = vector.multi_reduction <add>, %143, %cst_48 [1] : vector<8x32xf32> to vector<8xf32>
    %149 = vector.shape_cast %148 : vector<8xf32> to vector<8x1xf32>
    %cst_49 = arith.constant 3.200000e+01 : f32
    %150 = vector.broadcast %cst_49 : f32 to vector<8x1xf32>
    %151 = arith.divf %149, %150 : vector<8x1xf32>
    %152 = vector.broadcast %151 : vector<8x1xf32> to vector<8x32xf32>
    %153 = arith.subf %143, %152 : vector<8x32xf32>
    %154 = vector.broadcast %151 : vector<8x1xf32> to vector<8x32xf32>
    %155 = arith.subf %143, %154 : vector<8x32xf32>
    %156 = arith.mulf %153, %155 : vector<8x32xf32>
    %cst_50 = arith.constant dense<0.000000e+00> : vector<8xf32>
    %157 = vector.multi_reduction <add>, %156, %cst_50 [1] : vector<8x32xf32> to vector<8xf32>
    %158 = vector.shape_cast %157 : vector<8xf32> to vector<8x1xf32>
    %cst_51 = arith.constant 3.200000e+01 : f32
    %159 = vector.broadcast %cst_51 : f32 to vector<8x1xf32>
    %160 = arith.divf %158, %159 : vector<8x1xf32>
    %161 = vector.broadcast %151 : vector<8x1xf32> to vector<8x32xf32>
    %162 = arith.subf %143, %161 : vector<8x32xf32>
    %cst_52 = arith.constant 9.99999974E-6 : f32
    %163 = vector.broadcast %cst_52 : f32 to vector<8x1xf32>
    %164 = arith.addf %160, %163 : vector<8x1xf32>
    %165 = math.rsqrt %164 : vector<8x1xf32>
    %166 = vector.broadcast %165 : vector<8x1xf32> to vector<8x32xf32>
    %167 = arith.mulf %162, %166 : vector<8x32xf32>
    %168 = vector.shape_cast %145 : vector<32xf32> to vector<1x32xf32>
    %169 = vector.broadcast %168 : vector<1x32xf32> to vector<8x32xf32>
    %170 = arith.mulf %167, %169 : vector<8x32xf32>
    %171 = vector.shape_cast %147 : vector<32xf32> to vector<1x32xf32>
    %172 = vector.broadcast %171 : vector<1x32xf32> to vector<8x32xf32>
    %173 = arith.addf %170, %172 : vector<8x32xf32>
    %174 = arith.truncf %173 : vector<8x32xf32> to vector<8x32xbf16>
    %cst_53 = arith.constant 0.000000e+00 : f32
    %175 = vector.broadcast %cst_53 : f32 to vector<8x32xf32>
    %c0_54 = arith.constant 0 : index
    %c0_55 = arith.constant 0 : index
    %176 = vector.load %arg10[%c0_54, %c0_55] : memref<32x128xbf16, #tpu.memory_space<vmem>>, vector<32x128xbf16>
    %cst_56 = arith.constant dense<0.000000e+00> : vector<8x128xf32>
    %177 = tpu.matmul %174, %176, %cst_56 {dimension_numbers = #tpu.dot_dimension_numbers<[1], [0], [0], [1], [0, 0, 1, 1], [], []>} : vector<8x32xbf16>, vector<32x128xbf16>, vector<8x128xf32> -> vector<8x128xf32>
    %c0_57 = arith.constant 0 : index
    %c0_58 = arith.constant 0 : index
    %178 = vector.load %arg11[%c0_57, %c0_58] : memref<1x128xf32, #tpu.memory_space<vmem>>, vector<1x128xf32>
    %179 = vector.shape_cast %178 : vector<1x128xf32> to vector<128xf32>
    %180 = vector.shape_cast %179 : vector<128xf32> to vector<1x128xf32>
    %181 = vector.broadcast %180 : vector<1x128xf32> to vector<8x128xf32>
    %182 = arith.addf %177, %181 : vector<8x128xf32>
    %cst_59 = arith.constant 1.702000e+00 : f32
    %183 = vector.broadcast %cst_59 : f32 to vector<8x128xf32>
    %184 = arith.mulf %183, %182 : vector<8x128xf32>
    %185 = arith.negf %184 : vector<8x128xf32>
    %186 = math.exp %185 : vector<8x128xf32>
    %cst_60 = arith.constant 1.000000e+00 : f32
    %187 = vector.broadcast %cst_60 : f32 to vector<8x128xf32>
    %188 = arith.addf %187, %186 : vector<8x128xf32>
    %189 = arith.divf %187, %188 : vector<8x128xf32>
    %190 = arith.mulf %182, %189 : vector<8x128xf32>
    %191 = arith.truncf %190 : vector<8x128xf32> to vector<8x128xbf16>
    %c0_61 = arith.constant 0 : index
    %c0_62 = arith.constant 0 : index
    %192 = vector.load %arg12[%c0_61, %c0_62] : memref<128x32xbf16, #tpu.memory_space<vmem>>, vector<128x32xbf16>
    %cst_63 = arith.constant dense<0.000000e+00> : vector<8x32xf32>
    %193 = tpu.matmul %191, %192, %cst_63 {dimension_numbers = #tpu.dot_dimension_numbers<[1], [0], [0], [1], [0, 0, 1, 1], [], []>} : vector<8x128xbf16>, vector<128x32xbf16>, vector<8x32xf32> -> vector<8x32xf32>
    %194 = arith.addf %175, %193 : vector<8x32xf32>
    %195 = arith.addf %143, %194 : vector<8x32xf32>
    %c0_64 = arith.constant 0 : index
    %c0_65 = arith.constant 0 : index
    %196 = vector.load %arg13[%c0_64, %c0_65] : memref<1x32xf32, #tpu.memory_space<vmem>>, vector<1x32xf32>
    %197 = vector.shape_cast %196 : vector<1x32xf32> to vector<32xf32>
    %198 = vector.shape_cast %197 : vector<32xf32> to vector<1x32xf32>
    %199 = vector.broadcast %198 : vector<1x32xf32> to vector<8x32xf32>
    %200 = arith.addf %195, %199 : vector<8x32xf32>
    %201 = vector.shape_cast %200 : vector<8x32xf32> to vector<1x8x32xf32>
    %c0_66 = arith.constant 0 : index
    %c0_67 = arith.constant 0 : index
    %c0_68 = arith.constant 0 : index
    %202 = vector.load %arg14[%c0_66, %c0_67, %c0_68] : memref<1x8x32xf32, #tpu.memory_space<vmem>>, vector<1x8x32xf32>
    tpu.vector_store %arg14[%c0_66, %c0_67, %c0_68], %201 {strides = array<i32>} : memref<1x8x32xf32, #tpu.memory_space<vmem>>, vector<1x8x32xf32>,
    return
  }
  func.func @transform_0(%arg0: i32) -> (i32, i32, i32) {
    %c0_i32 = arith.constant 0 : i32
    %c0_i32_0 = arith.constant 0 : i32
    %c0_i32_1 = arith.constant 0 : i32
    return %arg0, %c0_i32, %c0_i32_0 : i32, i32, i32
  }
  func.func @transform_1(%arg0: i32) -> (i32, i32) {
    %c0_i32 = arith.constant 0 : i32
    %c0_i32_0 = arith.constant 0 : i32
    %c0_i32_1 = arith.constant 0 : i32
    return %c0_i32, %c0_i32_0 : i32, i32
  }
  func.func @transform_2(%arg0: i32) -> (i32, i32) {
    %c0_i32 = arith.constant 0 : i32
    %c0_i32_0 = arith.constant 0 : i32
    %c0_i32_1 = arith.constant 0 : i32
    return %c0_i32, %c0_i32_0 : i32, i32
  }
  func.func @transform_3(%arg0: i32) -> (i32, i32) {
    %c0_i32 = arith.constant 0 : i32
    %c0_i32_0 = arith.constant 0 : i32
    %c0_i32_1 = arith.constant 0 : i32
    return %c0_i32, %c0_i32_0 : i32, i32
  }
  func.func @transform_4(%arg0: i32) -> (i32, i32) {
    %c0_i32 = arith.constant 0 : i32
    %c0_i32_0 = arith.constant 0 : i32
    %c0_i32_1 = arith.constant 0 : i32
    return %c0_i32, %c0_i32_0 : i32, i32
  }
  func.func @transform_5(%arg0: i32) -> (i32, i32) {
    %c0_i32 = arith.constant 0 : i32
    %c0_i32_0 = arith.constant 0 : i32
    %c0_i32_1 = arith.constant 0 : i32
    return %c0_i32, %c0_i32_0 : i32, i32
  }
  func.func @transform_6(%arg0: i32) -> (i32, i32) {
    %c0_i32 = arith.constant 0 : i32
    %c0_i32_0 = arith.constant 0 : i32
    %c0_i32_1 = arith.constant 0 : i32
    return %c0_i32, %c0_i32_0 : i32, i32
  }
  func.func @transform_7(%arg0: i32) -> (i32, i32) {
    %c0_i32 = arith.constant 0 : i32
    %c0_i32_0 = arith.constant 0 : i32
    %c0_i32_1 = arith.constant 0 : i32
    return %c0_i32, %c0_i32_0 : i32, i32
  }
  func.func @transform_8(%arg0: i32) -> (i32, i32) {
    %c0_i32 = arith.constant 0 : i32
    %c0_i32_0 = arith.constant 0 : i32
    %c0_i32_1 = arith.constant 0 : i32
    return %c0_i32, %c0_i32_0 : i32, i32
  }
  func.func @transform_9(%arg0: i32) -> (i32, i32) {
    %c0_i32 = arith.constant 0 : i32
    %c0_i32_0 = arith.constant 0 : i32
    %c0_i32_1 = arith.constant 0 : i32
    return %c0_i32, %c0_i32_0 : i32, i32
  }
  func.func @transform_10(%arg0: i32) -> (i32, i32) {
    %c0_i32 = arith.constant 0 : i32
    %c0_i32_0 = arith.constant 0 : i32
    %c0_i32_1 = arith.constant 0 : i32
    return %c0_i32, %c0_i32_0 : i32, i32
  }
  func.func @transform_11(%arg0: i32) -> (i32, i32) {
    %c0_i32 = arith.constant 0 : i32
    %c0_i32_0 = arith.constant 0 : i32
    %c0_i32_1 = arith.constant 0 : i32
    return %c0_i32, %c0_i32_0 : i32, i32
  }
  func.func @transform_12(%arg0: i32) -> (i32, i32) {
    %c0_i32 = arith.constant 0 : i32
    %c0_i32_0 = arith.constant 0 : i32
    %c0_i32_1 = arith.constant 0 : i32
    return %c0_i32, %c0_i32_0 : i32, i32
  }
  func.func @transform_13(%arg0: i32) -> (i32, i32, i32) {
    %c0_i32 = arith.constant 0 : i32
    %c0_i32_0 = arith.constant 0 : i32
    %c0_i32_1 = arith.constant 0 : i32
    return %arg0, %c0_i32, %c0_i32_0 : i32, i32, i32
  }
}

</mosaic_0001>

<bundles_post_ra>
// kernel: tpu_custom_call.1
= control target key start
LH: loop header
LB: loop body
LE: loop exit
PB: predicated region body
PF: predicated region fallthrough
CT: control target
= control target key end

     0   :  { %s2195_s0 = inlined_call_operand.vmem [shape: f32[2,8,32], index: 0, kind: input, shape index: {}]   ;;  %s2196_s1 = inlined_call_operand.vmem [shape: f32[1,32], index: 1, kind: input, shape index: {}]   ;;  %s2197_s2 = inlined_call_operand.vmem [shape: f32[1,32], index: 2, kind: input, shape index: {}]   ;;  %s2198_s3 = inlined_call_operand.vmem [shape: bf16[32,96], index: 3, kind: input, shape index: {}]   ;;  %s2199_s4 = inlined_call_operand.vmem [shape: f32[1,96], index: 4, kind: input, shape index: {}]   ;;  %s2200_s5 = inlined_call_operand.vmem [shape: bf16[32,32], index: 5, kind: input, shape index: {}]   ;;  %s2201_s6 = inlined_call_operand.vmem [shape: f32[1,32], index: 6, kind: input, shape index: {}]   ;;  %s2202_s7 = inlined_call_operand.vmem [shape: f32[1,32], index: 7, kind: input, shape index: {}]   ;;  %s2203_s8 = inlined_call_operand.vmem [shape: f32[1,32], index: 8, kind: input, shape index: {}]   ;;  %s2204_s9 = inlined_call_operand.vmem [shape: bf16[32,128], index: 9, kind: input, shape index: {}]   ;;  %s2205_s10 = inlined_call_operand.vmem [shape: f32[1,128], index: 10, kind: input, shape index: {}]   ;;  %s2206_s11 = inlined_call_operand.vmem [shape: bf16[128,32], index: 11, kind: input, shape index: {}]   ;;  %s2207_s12 = inlined_call_operand.vmem [shape: f32[1,32], index: 12, kind: input, shape index: {}]   ;;  %s2208_s13 = inlined_call_operand.hbm [shape: f32[2,8,32], index: 13, kind: output, shape index: {}]  }
   0x1   :  { %2209 = sst [smem:[#allocation5_spill]] %s2195_s0 }
   0x2   :  { %2210 = sst [smem:[#allocation6_spill]] %s2196_s1 }
   0x3   :  { %2211 = sst [smem:[#allocation7_spill]] %s2197_s2 }
   0x4   :  { %18 = vsyncpa [#allocation3], 0 }
   0x5   :  { %20 = vsyncpa [#allocation3 + $0x1], 0  ;;  %s1902_s25 = smov 0   ;;  %s1904_s26 = smov 0  }
   0x6   :  { %s1906_s27 = smov 0   ;;  %s1908_s28 = smov 0  }
   0x7 LB: > { %s1923_s29 = sadd.s32 4294967295, %s1816_s28   ;;  %s1476_s30 = sadd.s32 4294967294, %s1816_s28   ;;  %s1816_s28 = sphi %s1908_s28, %s2220_s28   ;;  %s1812_s27 = sphi %s1906_s27, %s2219_s27   ;;  %s1808_s26 = sphi %s1904_s26, %s2218_s26   ;;  %s1804_s25 = sphi %s1902_s25, %s2217_s25  }
   0x8   : > { %s1927_s14 = sadd.s32 1, %s1816_s28   ;;  %s311_s15 = sadd.s32 1, %s1812_s27 }
   0x9   : > { %s308_s16 = ssub.s32 %s1816_s28, %s1927_s14  ;;  %p321_p0 = scmp.ne.s32.totalorder %s1812_s27, %s1808_s26 }
   0xa   : > { %p309_p1 = scmp.eq.s32.totalorder %s308_s16, 0  ;;  %p322_p2 = scmp.eq.s32.totalorder %s1923_s29, 1 }
   0xb   : > { %p327_p3 = scmp.ne.s32.totalorder %s1808_s26, %s1804_s25  ;;  %p328_p4 = scmp.eq.s32.totalorder %s1476_s30, 1 }
   0xc   : > { %s1938_s17 = scalar_select %p309_p1, %s1812_s27, %s311_s15  }
   0xd   : > { %p1940_p5 = por %p322_p2, %p321_p0  ;;  %p1944_p6 = por %p328_p4, %p327_p3 }
   0xe   : > { %p1479_p7 = scmp.ge.s32.totalorder %s1816_s28, 1  ;;  %p389_p8 = scmp.lt.s32.totalorder %s1816_s28, 3 }
  0x10   : > { %p390_p9 = pnand %p1479_p7, %p389_p8 }
  0x11   : > { %p432_p10 = scmp.lt.s32.totalorder (!%p390_p9), %s1923_s29, 1  ;;  %s2214_s0 = sld [smem:[#allocation5_spill]] (!%p390_p9) }
  0x12   : > { %393 = sbr.rel (%p390_p9) target bundleno = 3437 (0xd6d), region = 72  ;;  %s2215_s1 = sld [smem:[#allocation6_spill]] (!%p390_p9) }
  0x13   : > { %s2216_s2 = sld [smem:[#allocation7_spill]] (!%p390_p9)  ;;  %s1820_s16 = smov (!%p390_p9), 64  }
  0x14   : > { %s1823_s22 = smov (!%p390_p9), 120   ;;  %s1824_s23 = smov (!%p390_p9), 56  }
  0x15   : > { %s1826_s30 = smov (!%p390_p9), 112   ;;  %s1827_s15 = smov (!%p390_p9), 48  }
  0x17   : > { %s433_s20 = scalar_select %p432_p10, %s1923_s29, 1  ;;  %vm440_vm0 = vcmask 261120   ;;  %v1720_v7 = vld [vmem:[%s2198_s3 + $0x8] sm:$0xff]   ;;  %v1818_v8 = vmov 0.0   ;;  %vm1819_vm1 = vmmov 0   ;;  %v1721_v9 = vld [vmem:[%s2198_s3] sm:$0xff]  }
  0x18   : > { %1560 = vmatprep.subr.bf16.mxu1 %v1818_v8  ;;  %1564 = vmatprep.mubr.msk.bf16.mxu1 %vm1819_vm1, %v1818_v8  ;;  %v1482_v14 = vld [vmem:[%s2215_s1] ss:$0 sm:$0xff]  ;;  %vm546_vm2 = vcmask 64512   ;;  %vm608_vm3 = vcmask 1043456  }
  0x19   : > { %s1481_s21 = sshll.u32 %s433_s20, 3  ;;  %1561 = vmatpush3.bf16.msra.mxu1 %v1720_v7  ;;  %1586 = vmatprep.subr.bf16.mxu0 %v1818_v8  ;;  %v1483_v16 = vld [vmem:[%s2216_s2] ss:$0 sm:$0xff]  ;;  %s1821_s20 = smov 96  }
  0x1a   : > { %s435_s24 = scalar_lea.vmem %s2214_s0, %s1481_s21  ;;  %1562 = vmatprep.subr.bf16.mxu1 %v1818_v8  ;;  %1588 = vmatprep.mubr.msk.bf16.mxu0 %vm1819_vm1, %v1818_v8  ;;  %v1484_v20 = vld [vmem:[%s2199_s4] ss:$0 sm:$0xff]  ;;  %s1822_s21 = smov 88  }
  0x1b   : > { %v1955_v0 = vld [vmem:[%s435_s24] sm:$0xff]  ;;  %s1825_s24 = smov 80  }
  0x1c   : > { %v441_v1 = vsel %vm440_vm0, %v1955_v0, 0.0 }
  0x1d   : > { %442 = vadd.xlane.f32.xlu0 %v441_v1  ;;  %1563 = vmatpush3.bf16.msra.mxu1 %v1721_v9  ;;  %v536_v1 = vld [vmem:[%s2200_s5] sm:$0xf] }
  0x1e   : > { %1568 = vmatprep.subr.bf16.mxu1 %v1818_v8 }
  0xa6   : > { %v443_v2 = vpop.xlane.xlu0 %442 }
  0xa7   : > { %v445_v3 = vmul.f32 0.03125, %v443_v2  ;;  %v817_v2 = vsel %vm608_vm3, %v536_v1, 0 }
  0xa9   : > { %v446_v4 = vsub.f32 %v1955_v0, %v445_v3  ;;  %v537_v3 = vld [vmem:[%s2200_s5 + $0x4] sm:$0xf] }
  0xab   : > { %v447_v5 = vmul.f32 %v446_v4, %v446_v4 }
  0xad   : > { %v448_v6 = vsel %vm440_vm0, %v447_v5, 0.0 }
  0xae   : > { %449 = vadd.xlane.f32.xlu0 %v448_v6 }
 0x137   : > { %v450_v10 = vpop.xlane.xlu0 %449 }
 0x138   : > { %v451_v11 = vmul.f32 0.03125, %v450_v10 }
 0x13a   : > { %v452_v12 = vadd.f32 1e-05, %v451_v11 }
 0x13c   : > { %1732 = vrsqrt.f32 %v452_v12 }
 0x149   : > { %v1733_v13 = vpop.eup %1732 }
 0x14a   : > { %v454_v15 = vmul.f32 %v1733_v13, %v446_v4  ;;  %v771_v4 = vsel %vm608_vm3, %v537_v3, 0 }
 0x14c   : > { %v461_v17 = vmul.f32 %v1482_v14, %v454_v15 }
 0x14e   : > { %v468_v18 = vadd.f32 %v1483_v16, %v461_v17 }
 0x150   : > { %v469_v19 = vpack.c.bf16 %v468_v18, %v468_v18 }
 0x152   : > { %1565 = vmatmul.mubr.msk.bf16.vlgmr.msra.gmra.mxu1 %vm440_vm0, %v469_v19 }
 0x153   : > { %1570 = vmatprep.mubr.msk.bf16.mxu1 %vm1819_vm1, %v1818_v8 }
 0x212   : > { %v530_v21 = vpop.f32.mrf.mxu1 }
 0x213   : > { %v531_v22 = vadd.f32 %v1484_v20, %v530_v21 }
 0x214   : > { %v1566_v23 = vpop.f32.mrf.mxu1 }
 0x215   : > { %v1987_v24 = vpack.c.bf16 %v531_v22, %v531_v22  ;;  %v540_v27 = vmul.f32 0.35355338, %v531_v22 }
 0x216   : > { %v533_v25 = vpop.f32.mrf.mxu1 }
 0x217   : > { %603 = vrot.lane.b32.xlu0 %v1987_v24, %s1820_s16  ;;  %544 = vrot.lane.b32.xlu1 %v1987_v24, %s1821_s20  ;;  %v1992_v28 = vpack.c.bf16 %v540_v27, %v540_v27  ;;  %s1828_s16 = smov 72   ;;  %s1831_s20 = smov [#allocation2]  }
 0x218   : > { %v1567_v26 = vpop.f32.mrf.mxu1 }
 0x21b   : > { %658 = vrot.lane.b32.xlu0 %v1987_v24, %s1822_s21  ;;  %s1760_s21 = sshll.u32 %s1831_s20, 4  ;;  %s1761_s21 = int_to_ptr.vmem [resolvable:$false] %s1760_s21 }
 0x21c   : > { %s1762_s0 = scalar_lea.vmem %s1761_s21, 256 }
 0x21f   : > { %656 = vrot.lane.b32.xlu0 %v1992_v28, %s1823_s22  ;;  %s1829_s22 = smov 104  }
 0x289   : > { %v545_v29 = vpop.permute.xlu1 %544  ;;  %v604_v31 = vpop.permute.xlu0 %603 }
 0x28a   : > { %v551_v30 = vsel %vm546_vm2, %v545_v29, 0  ;;  %v610_v32 = vsel %vm608_vm3, %v604_v31, 0 }
 0x28b   : > { %1569 = vmatpush3.bf16.xpose.msra.mxu1 %v551_v30 }
 0x28c   : > { %1574 = vmatprep.subr.bf16.mxu1 %v1818_v8 }
 0x28d   : > { %v659_v44 = vpop.permute.xlu0 %658 }
 0x28e   : > { %v664_v46 = vsel %vm546_vm2, %v659_v44, 0 }
 0x291   : > { %v657_v47 = vpop.permute.xlu0 %656 }
 0x292   : > { %1571 = vmatmul.mubr.msk.bf16.vlgmr.msra.gmra.mxu1 %vm546_vm2, %v1992_v28 }
 0x293   : > { %1575 = vmatpush3.bf16.msra.mxu1 %v610_v32  ;;  %1576 = vmatprep.mubr.msk.bf16.mxu1 %vm1819_vm1, %v1818_v8 }
 0x294   : > { %1580 = vmatprep.subr.bf16.mxu1 %v1818_v8 }
 0x352   : > { %v587_v33 = vpop.f32.mrf.mxu1 }
 0x353   : > { %v593_v34 = vsel %vm546_vm2, %v587_v33, -inf }
 0x354   : > { %594 = vmax.xlane.f32.xlu1 %v593_v34  ;;  %v1572_v35 = vpop.f32.mrf.mxu1 }
 0x356   : > { %v590_v36 = vpop.f32.mrf.mxu1 }
 0x358   : > { %v1573_v37 = vpop.f32.mrf.mxu1 }
 0x365   : > { %716 = vrot.lane.b32.xlu1 %v1987_v24, %s1824_s23 }
 0x3dd   : > { %v595_v38 = vpop.xlane.xlu1 %594 }
 0x3de   : > { %v596_v39 = vsub.f32 %v587_v33, %v595_v38 }
 0x3e0   : > { %v597_v40 = vmul.f32 1.442695, %v596_v39 }
 0x3e1   : > { %v717_v41 = vpop.permute.xlu1 %716 }
 0x3e2   : > { %1734 = vpow2.f32 %v597_v40  ;;  %v722_v42 = vsel %vm608_vm3, %v717_v41, 0 }
 0x3e3   : > { %1587 = vmatpush3.bf16.msra.mxu0 %v722_v42 }
 0x3e4   : > { %1598 = vmatprep.subr.bf16.mxu0 %v1818_v8 }
 0x3ef   : > { %v1735_v43 = vpop.eup %1734 }
 0x3f0   : > { %v602_v45 = vpack.c.bf16 %v1735_v43, %v1735_v43  ;;  %v599_v63 = vsel %vm546_vm2, %v1735_v43, 0.0 }
 0x3f2   : > { %1577 = vmatmul.mubr.msk.bf16.vlgmr.msra.gmra.mxu1 %vm546_vm2, %v602_v45 }
 0x3f3   : > { %1581 = vmatpush3.bf16.xpose.msra.mxu1 %v664_v46  ;;  %1582 = vmatprep.mubr.msk.bf16.mxu1 %vm1819_vm1, %v1818_v8 }
 0x3f4   : > { %1592 = vmatprep.subr.bf16.mxu1 %v1818_v8 }
 0x3fa   : > { %1583 = vmatmul.mubr.msk.bf16.vlgmr.msra.gmra.mxu1 %vm546_vm2, %v657_v47  ;;  %v538_v47 = vld [vmem:[%s2200_s5 + $0x8] sm:$0xf] }
 0x3fb   : > { %1594 = vmatprep.mubr.msk.bf16.mxu1 %vm1819_vm1, %v1818_v8  ;;  %1593 = vmatpush3.bf16.msra.mxu1 %v771_v4 }
 0x3fc   : > { %1604 = vmatprep.subr.bf16.mxu1 %v1818_v8 }
 0x4b2   : > { %v646_v48 = vpop.f32.mrf.mxu1 }
 0x4b4   : > { %v1578_v49 = vpop.f32.mrf.mxu1 }
 0x4b6   : > { %v649_v50 = vpop.f32.mrf.mxu1 }
 0x4b8   : > { %v1579_v51 = vpop.f32.mrf.mxu1 }
 0x4ba   : > { %v700_v52 = vpop.f32.mrf.mxu1 }
 0x4bb   : > { %v706_v53 = vsel %vm546_vm2, %v700_v52, -inf }
 0x4bc   : > { %707 = vmax.xlane.f32.xlu0 %v706_v53  ;;  %v1584_v54 = vpop.f32.mrf.mxu1 }
 0x4be   : > { %v703_v55 = vpop.f32.mrf.mxu1 }
 0x4c0   : > { %v1585_v56 = vpop.f32.mrf.mxu1 }
 0x4d2   : > { %861 = vrot.lane.b32.xlu0 %v1987_v24, %s1825_s24 }
 0x4d6   : > { %859 = vrot.lane.b32.xlu0 %v1992_v28, %s1826_s30 }
 0x545   : > { %v708_v57 = vpop.xlane.xlu0 %707 }
 0x546   : > { %v709_v58 = vsub.f32 %v700_v52, %v708_v57 }
 0x548   : > { %v710_v59 = vmul.f32 1.442695, %v709_v58 }
 0x549   : > { %v862_v16 = vpop.permute.xlu0 %861 }
 0x54a   : > { %1736 = vpow2.f32 %v710_v59  ;;  %v867_v20 = vsel %vm546_vm2, %v862_v16, 0 }
 0x54d   : > { %v860_v22 = vpop.permute.xlu0 %859 }
 0x557   : > { %v1737_v60 = vpop.eup %1736 }
 0x558   : > { %v712_v61 = vsel %vm546_vm2, %v1737_v60, 0.0  ;;  %v715_v62 = vpack.c.bf16 %v1737_v60, %v1737_v60 }
 0x559   : > { %713 = vadd.xlane.f32.xlu1 %v712_v61 }
 0x55a   : > { %1589 = vmatmul.mubr.msk.bf16.vlgmr.msra.gmra.mxu0 %vm546_vm2, %v715_v62 }
 0x55b   : > { %1600 = vmatprep.mubr.msk.bf16.mxu0 %vm1819_vm1, %v1818_v8  ;;  %1599 = vmatpush3.bf16.msra.mxu0 %v817_v2 }
 0x55c   : > { %1610 = vmatprep.subr.bf16.mxu0 %v1818_v8 }
 0x55d   : > { %600 = vadd.xlane.f32.xlu1 %v599_v63 }
 0x56e   : > { %919 = vrot.lane.b32.xlu1 %v1987_v24, %s1827_s15  ;;  %s429_s15 = sand.u32 1, %s1808_s26  }
 0x572   : > { %1019 = vrot.lane.b32.xlu1 %v1987_v24, %s1828_s16  ;;  %s1830_s16 = smov 40  }
 0x576   : > { %1017 = vrot.lane.b32.xlu1 %v1992_v28, %s1829_s22  ;;  %s1518_s22 = sshll.u32 %s1923_s29, 7  ;;  %s1404_s29 = scalar_lea.sflag [#allocation3], %s429_s15 }
 0x577   : > { %s2153_s1 = scalar_lea.hbm %s2208_s13, %s1518_s22 }
 0x5e2   : > { %v714_v5 = vpop.xlane.xlu1 %713 }
 0x5e6   : > { %v601_v6 = vpop.xlane.xlu1 %600 }
 0x5e7   : > { %1738 = vrcp.f32 %v601_v6 }
 0x5e8   : > { %1740 = vrcp.f32 %v714_v5 }
 0x5ea   : > { %v920_v10 = vpop.permute.xlu1 %919 }
 0x5eb   : > { %v925_v12 = vsel %vm608_vm3, %v920_v10, 0 }
 0x5ee   : > { %v1020_v42 = vpop.permute.xlu1 %1019 }
 0x5ef   : > { %v1025_v45 = vsel %vm546_vm2, %v1020_v42, 0  ;;  %v1501_v42 = vld [vmem:[%s2202_s7] ss:$0 sm:$0xff] }
 0x5f2   : > { %v1018_v46 = vpop.permute.xlu1 %1017 }
 0x5f4   : > { %v1739_v7 = vpop.eup %1738 }
 0x5f5   : > { %v653_v9 = vmul.f32 %v1739_v7, %v646_v48  ;;  %v1741_v13 = vpop.eup %1740  ;;  %v974_v48 = vsel %vm608_vm3, %v538_v47, 0 }
 0x5f7   : > { %v654_v11 = vpack.c.bf16 %v653_v9, %v653_v9 }
 0x5f9   : > { %1601 = vmatmul.mubr.msk.bf16.vlgmr.msra.gmra.mxu0 %vm546_vm2, %v654_v11 }
 0x5fa   : > { %1611 = vmatpush3.bf16.msra.mxu0 %v925_v12  ;;  %1612 = vmatprep.mubr.msk.bf16.mxu0 %vm1819_vm1, %v1818_v8 }
 0x5fb   : > { %1622 = vmatprep.subr.bf16.mxu0 %v1818_v8 }
 0x61a   : > { %v758_v14 = vpop.f32.mrf.mxu0 }
 0x61b   : > { %v765_v15 = vmul.f32 %v1741_v13, %v758_v14 }
 0x61c   : > { %v1590_v17 = vpop.f32.mrf.mxu0 }
 0x61d   : > { %v766_v18 = vpack.c.bf16 %v765_v15, %v765_v15 }
 0x61e   : > { %v761_v19 = vpop.f32.mrf.mxu0 }
 0x61f   : > { %1595 = vmatmul.mubr.msk.bf16.vlgmr.msra.gmra.mxu1 %vm546_vm2, %v766_v18 }
 0x620   : > { %1605 = vmatpush3.bf16.xpose.msra.mxu1 %v867_v20  ;;  %v1591_v21 = vpop.f32.mrf.mxu0  ;;  %1606 = vmatprep.mubr.msk.bf16.mxu1 %vm1819_vm1, %v1818_v8 }
 0x621   : > { %1616 = vmatprep.subr.bf16.mxu1 %v1818_v8 }
 0x627   : > { %1607 = vmatmul.mubr.msk.bf16.vlgmr.msra.gmra.mxu1 %vm546_vm2, %v860_v22 }
 0x628   : > { %1618 = vmatprep.mubr.msk.bf16.mxu1 %vm1819_vm1, %v1818_v8  ;;  %1617 = vmatpush3.bf16.msra.mxu1 %v974_v48  ;;  %v1724_v48 = vld [vmem:[%s2206_s11 + $0x38] sm:$0xff]  }
 0x629   : > { %1628 = vmatprep.subr.bf16.mxu1 %v1818_v8 }
 0x6b9   : > { %v853_v23 = vpop.f32.mrf.mxu0 }
 0x6bb   : > { %v1602_v25 = vpop.f32.mrf.mxu0 }
 0x6bd   : > { %v856_v26 = vpop.f32.mrf.mxu0 }
 0x6bf   : > { %v1603_v27 = vpop.f32.mrf.mxu0 }
 0x6df   : > { %v807_v28 = vpop.f32.mrf.mxu1 }
 0x6e0   : > { %v2049_v29 = vadd.f32 %v853_v23, %v807_v28  ;;  %v1500_v23 = vld [vmem:[%s2201_s6] ss:$0 sm:$0xff] }
 0x6e1   : > { %v1596_v30 = vpop.f32.mrf.mxu1 }
 0x6e3   : > { %v810_v31 = vpop.f32.mrf.mxu1 }
 0x6e5   : > { %v1597_v32 = vpop.f32.mrf.mxu1 }
 0x6e7   : > { %v903_v33 = vpop.f32.mrf.mxu1 }
 0x6e8   : > { %v909_v34 = vsel %vm546_vm2, %v903_v33, -inf }
 0x6e9   : > { %910 = vmax.xlane.f32.xlu0 %v909_v34  ;;  %v1608_v35 = vpop.f32.mrf.mxu1 }
 0x6eb   : > { %v906_v36 = vpop.f32.mrf.mxu1 }
 0x6ed   : > { %v1609_v37 = vpop.f32.mrf.mxu1 }
 0x6ee   : > { %v1722_v37 = vld [vmem:[%s2204_s9 + $0x8] sm:$0xff]  }
 0x772   : > { %v911_v38 = vpop.xlane.xlu0 %910 }
 0x773   : > { %v912_v39 = vsub.f32 %v903_v33, %v911_v38 }
 0x775   : > { %v913_v40 = vmul.f32 1.442695, %v912_v39 }
 0x777   : > { %1742 = vpow2.f32 %v913_v40 }
 0x784   : > { %v1743_v41 = vpop.eup %1742 }
 0x785   : > { %v915_v43 = vsel %vm546_vm2, %v1743_v41, 0.0  ;;  %v918_v44 = vpack.c.bf16 %v1743_v41, %v1743_v41 }
 0x786   : > { %916 = vadd.xlane.f32.xlu1 %v915_v43 }
 0x787   : > { %1613 = vmatmul.mubr.msk.bf16.vlgmr.msra.gmra.mxu0 %vm546_vm2, %v918_v44  ;;  %v1502_v44 = vld [vmem:[%s2203_s8] ss:$0 sm:$0xff] }
 0x788   : > { %1623 = vmatpush3.bf16.xpose.msra.mxu0 %v1025_v45  ;;  %1624 = vmatprep.mubr.msk.bf16.mxu0 %vm1819_vm1, %v1818_v8 }
 0x789   : > { %1634 = vmatprep.subr.bf16.mxu0 %v1818_v8 }
 0x78f   : > { %1625 = vmatmul.mubr.msk.bf16.vlgmr.msra.gmra.mxu0 %vm546_vm2, %v1018_v46 }
 0x790   : > { %1636 = vmatprep.mubr.msk.bf16.mxu0 %vm1819_vm1, %v1818_v8 }
 0x80f   : > { %v917_v49 = vpop.xlane.xlu1 %916 }
 0x810   : > { %1744 = vrcp.f32 %v917_v49  ;;  %v1725_v49 = vld [vmem:[%s2206_s11 + $0x30] sm:$0xff]  }
 0x81d   : > { %v1745_v50 = vpop.eup %1744 }
 0x847   : > { %v961_v51 = vpop.f32.mrf.mxu0 }
 0x848   : > { %v968_v52 = vmul.f32 %v1745_v50, %v961_v51  ;;  %v1726_v50 = vld [vmem:[%s2206_s11 + $0x28] sm:$0xff]   ;;  %v1727_v51 = vld [vmem:[%s2206_s11 + $0x20] sm:$0xff]  }
 0x849   : > { %v1614_v53 = vpop.f32.mrf.mxu0 }
 0x84a   : > { %v969_v54 = vpack.c.bf16 %v968_v52, %v968_v52  ;;  %v1728_v52 = vld [vmem:[%s2206_s11 + $0x18] sm:$0xff]   ;;  %v1729_v53 = vld [vmem:[%s2206_s11 + $0x10] sm:$0xff]  }
 0x84b   : > { %v964_v55 = vpop.f32.mrf.mxu0 }
 0x84c   : > { %1619 = vmatmul.mubr.msk.bf16.vlgmr.msra.gmra.mxu1 %vm546_vm2, %v969_v54  ;;  %v1730_v54 = vld [vmem:[%s2206_s11 + $0x8] sm:$0xff]   ;;  %v1731_v55 = vld [vmem:[%s2206_s11] sm:$0xff]  }
 0x84d   : > { %v1615_v56 = vpop.f32.mrf.mxu0  ;;  %1630 = vmatprep.mubr.msk.bf16.mxu1 %vm1819_vm1, %v1818_v8 }
 0x84e   : > { %v1503_v56 = vld [vmem:[%s2205_s10] ss:$0 sm:$0xff] }
 0x84f   : > { %v1061_v57 = vpop.f32.mrf.mxu0 }
 0x850   : > { %v1067_v58 = vsel %vm546_vm2, %v1061_v57, -inf }
 0x851   : > { %1068 = vmax.xlane.f32.xlu0 %v1067_v58  ;;  %v1626_v59 = vpop.f32.mrf.mxu0 }
 0x853   : > { %v1064_v60 = vpop.f32.mrf.mxu0 }
 0x855   : > { %v1627_v61 = vpop.f32.mrf.mxu0 }
 0x867   : > { %1077 = vrot.lane.b32.xlu0 %v1987_v24, %s1830_s16  ;;  %v539_v24 = vld [vmem:[%s2200_s5 + $0xc] sm:$0xf]  ;;  %s1480_s16 = sshll.u32 %s429_s15, 3 }
 0x868   : > { %v1132_v7 = vsel %vm608_vm3, %v539_v24, 0  ;;  %s431_s23 = scalar_lea.vmem [#allocation2], %s1480_s16 }
 0x869   : > { %1635 = vmatpush3.bf16.msra.mxu0 %v1132_v7  ;;  %s1417_s24 = sshll.u32 %s431_s23, 4  ;;  %s2155_s24 = int_to_ptr.vmem [resolvable:$true] %s1417_s24 }
 0x86a   : > { %1648 = vmatprep.subr.bf16.mxu0 %v1818_v8  ;;  %s1756_s16 = scalar_lea.vmem %s2155_s24, 128  ;;  %p1763_p0 = scmp.lt.s32.totalorder %s2155_s24, %s1761_s21 }
 0x86b   : > { %p1757_p11 = scmp.ne.s32.totalorder %s2155_s24, %s1756_s16  ;;  %p1764_p1 = scmp.lt.s32.totalorder %s1762_s0, %s1756_s16 }
 0x86d   : > { %p1758_p12 = pnand %p1757_p11, %p1940_p5  ;;  %p1765_p2 = por %p1764_p1, %p1763_p0 }
 0x86f   : > { %p1759_p13 = pneg %p1758_p12 }
 0x871   : > { %p1766_p3 = pnand %p1765_p2, %p1759_p13 }
 0x8da   : > { %v1069_v62 = vpop.xlane.xlu0 %1068 }
 0x8db   : > { %v1070_v63 = vsub.f32 %v1061_v57, %v1069_v62 }
 0x8dd   : > { %v1071_v1 = vmul.f32 1.442695, %v1070_v63 }
 0x8de   : > { %v1078_v2 = vpop.permute.xlu0 %1077 }
 0x8df   : > { %1746 = vpow2.f32 %v1071_v1  ;;  %v1083_v3 = vsel %vm608_vm3, %v1078_v2, 0 }
 0x8e0   : > { %1629 = vmatpush3.bf16.msra.mxu1 %v1083_v3 }
 0x8e1   : > { %1640 = vmatprep.subr.bf16.mxu1 %v1818_v8 }
 0x8ec   : > { %v1747_v4 = vpop.eup %1746 }
 0x8ed   : > { %v1073_v5 = vsel %vm546_vm2, %v1747_v4, 0.0  ;;  %v1076_v6 = vpack.c.bf16 %v1747_v4, %v1747_v4 }
 0x8ee   : > { %1074 = vadd.xlane.f32.xlu0 %v1073_v5 }
 0x8ef   : > { %1631 = vmatmul.mubr.msk.bf16.vlgmr.msra.gmra.mxu1 %vm546_vm2, %v1076_v6  ;;  %v1516_v6 = vld [vmem:[%s2207_s12] ss:$0 sm:$0xff] }
 0x8f0   : > { %1644 = vmatprep.mubr.msk.bf16.mxu1 %vm1819_vm1, %v1818_v8  ;;  %1641 = vmatpush3.bf16.msra.mxu1 %v1722_v37 }
 0x8f1   : > { %1642 = vmatprep.subr.bf16.mxu1 %v1818_v8 }
 0x90c   : > { %v1010_v9 = vpop.f32.mrf.mxu1 }
 0x90d   : > { %v1016_v10 = vadd.f32 %v1010_v9, %v2049_v29 }
 0x90e   : > { %v1620_v11 = vpop.f32.mrf.mxu1 }
 0x910   : > { %v1013_v12 = vpop.f32.mrf.mxu1 }
 0x912   : > { %v1621_v13 = vpop.f32.mrf.mxu1 }
 0x977   : > { %v1075_v14 = vpop.xlane.xlu0 %1074 }
 0x978   : > { %1748 = vrcp.f32 %v1075_v14 }
 0x985   : > { %v1749_v15 = vpop.eup %1748 }
 0x9af   : > { %v1119_v16 = vpop.f32.mrf.mxu1 }
 0x9b0   : > { %v1126_v17 = vmul.f32 %v1749_v15, %v1119_v16 }
 0x9b1   : > { %v1632_v18 = vpop.f32.mrf.mxu1 }
 0x9b2   : > { %v1127_v19 = vpack.c.bf16 %v1126_v17, %v1126_v17 }
 0x9b3   : > { %v1122_v20 = vpop.f32.mrf.mxu1 }
 0x9b4   : > { %1637 = vmatmul.mubr.msk.bf16.vlgmr.msra.gmra.mxu0 %vm546_vm2, %v1127_v19 }
 0x9b5   : > { %v1633_v21 = vpop.f32.mrf.mxu1  ;;  %1664 = vmatprep.mubr.msk.bf16.mxu0 %vm1819_vm1, %v1818_v8  ;;  %1649 = vmatpush3.bf16.msra.mxu0 %v1724_v48 }
 0x9b6   : > { %1650 = vmatprep.subr.bf16.mxu0 %v1818_v8 }
 0x9b9   : > { %1651 = vmatpush3.bf16.msra.mxu0 %v1725_v49 }
 0x9ba   : > { %1652 = vmatprep.subr.bf16.mxu0 %v1818_v8 }
 0x9bd   : > { %1653 = vmatpush3.bf16.msra.mxu0 %v1726_v50 }
 0x9be   : > { %1654 = vmatprep.subr.bf16.mxu0 %v1818_v8 }
 0x9c1   : > { %1655 = vmatpush3.bf16.msra.mxu0 %v1727_v51 }
 0x9c2   : > { %1656 = vmatprep.subr.bf16.mxu0 %v1818_v8 }
 0x9c5   : > { %1657 = vmatpush3.bf16.msra.mxu0 %v1728_v52 }
 0x9c6   : > { %1658 = vmatprep.subr.bf16.mxu0 %v1818_v8 }
 0x9c9   : > { %1659 = vmatpush3.bf16.msra.mxu0 %v1729_v53 }
 0x9ca   : > { %1660 = vmatprep.subr.bf16.mxu0 %v1818_v8 }
 0x9cd   : > { %1661 = vmatpush3.bf16.msra.mxu0 %v1730_v54 }
 0x9ce   : > { %1662 = vmatprep.subr.bf16.mxu0 %v1818_v8 }
 0x9d1   : > { %1663 = vmatpush3.bf16.msra.mxu0 %v1731_v55 }
 0xa74   : > { %v1168_v22 = vpop.f32.mrf.mxu0 }
 0xa75   : > { %v1174_v25 = vadd.f32 %v1168_v22, %v1016_v10 }
 0xa76   : > { %v1638_v26 = vpop.f32.mrf.mxu0 }
 0xa77   : > { %v1182_v27 = vadd.f32 %v1500_v23, %v1174_v25 }
 0xa78   : > { %v1171_v28 = vpop.f32.mrf.mxu0 }
 0xa79   : > { %v2090_v29 = vadd.f32 %v1182_v27, %v1955_v0  ;;  %v1723_v0 = vld [vmem:[%s2204_s9] sm:$0xff]  }
 0xa7a   : > { %v1639_v30 = vpop.f32.mrf.mxu0  ;;  %1643 = vmatpush3.bf16.msra.mxu1 %v1723_v0 }
 0xa7b   : > { %v1186_v31 = vsel %vm440_vm0, %v2090_v29, 0.0 }
 0xa7c   : > { %1187 = vadd.xlane.f32.xlu1 %v1186_v31 }
 0xb05   : > { %v1188_v32 = vpop.xlane.xlu1 %1187 }
 0xb06   : > { %v1189_v33 = vmul.f32 0.03125, %v1188_v32 }
 0xb08   : > { %v1190_v34 = vsub.f32 %v2090_v29, %v1189_v33 }
 0xb0a   : > { %v1191_v35 = vmul.f32 %v1190_v34, %v1190_v34 }
 0xb0c   : > { %v1192_v36 = vsel %vm440_vm0, %v1191_v35, 0.0 }
 0xb0d   : > { %1193 = vadd.xlane.f32.xlu1 %v1192_v36 }
 0xb96   : > { %v1194_v38 = vpop.xlane.xlu1 %1193 }
 0xb97   : > { %v1195_v39 = vmul.f32 0.03125, %v1194_v38 }
 0xb99   : > { %v1196_v40 = vadd.f32 1e-05, %v1195_v39 }
 0xb9b   : > { %1750 = vrsqrt.f32 %v1196_v40 }
 0xba8   : > { %v1751_v41 = vpop.eup %1750 }
 0xba9   : > { %v1198_v43 = vmul.f32 %v1751_v41, %v1190_v34 }
 0xbab   : > { %v1205_v45 = vmul.f32 %v1501_v42, %v1198_v43 }
 0xbad   : > { %v1212_v46 = vadd.f32 %v1502_v44, %v1205_v45 }
 0xbaf   : > { %v1213_v47 = vpack.c.bf16 %v1212_v46, %v1212_v46 }
 0xbb1   : > { %1645 = vmatmul.mubr.msk.bf16.vlgmr.msra.gmra.mxu1 %vm440_vm0, %v1213_v47 }
 0xc71   : > { %v1274_v57 = vpop.f32.mrf.mxu1 }
 0xc72   : > { %v1275_v58 = vadd.f32 %v1503_v56, %v1274_v57 }
 0xc73   : > { %v1646_v59 = vpop.f32.mrf.mxu1 }
 0xc74   : > { %v1507_v60 = vmul.f32 -1.702, %v1275_v58 }
 0xc75   : > { %v1277_v61 = vpop.f32.mrf.mxu1 }
 0xc76   : > { %v1282_v62 = vmul.f32 1.442695, %v1507_v60 }
 0xc77   : > { %v1647_v63 = vpop.f32.mrf.mxu1 }
 0xc78   : > { %1752 = vpow2.f32 %v1282_v62 }
 0xc85   : > { %v1753_v8 = vpop.eup %1752 }
 0xc86   : > { %v1284_v1 = vadd.f32 1.0, %v1753_v8 }
 0xc88   : > { %1754 = vrcp.f32 %v1284_v1 }
 0xc95   : > { %v1755_v2 = vpop.eup %1754 }
 0xc96   : > { %v1287_v3 = vmul.f32 %v1755_v2, %v1275_v58 }
 0xc98   : > { %v1288_v4 = vpack.c.bf16 %v1287_v3, %v1287_v3 }
 0xc9a   : > { %1665 = vmatmul.mubr.bf16.vlgmr.msra.gmra.mxu0 %v1288_v4 }
 0xd5a   : > { %v1387_v5 = vpop.f32.mrf.mxu0 }
 0xd5b   : > { %v1393_v24 = vadd.f32 %v1387_v5, %v2090_v29 }
 0xd5c   : > { %v1666_v7 = vpop.f32.mrf.mxu0 }
 0xd5d   : > { %v1401_v9 = vadd.f32 %v1516_v6, %v1393_v24 }
 0xd5e   : > { %v1390_v10 = vpop.f32.mrf.mxu0 }
 0xd5f   : > { %1402 = vst.msk [vmem:[%s431_s23] sm:$0xff] %vm440_vm0, %v1401_v9 }
 0xd60   : > { %v1667_v11 = vpop.f32.mrf.mxu0 }
 0xd61   : > { %1769 = shalt.err (!%p1766_p3)
}
 0xd62   : > { %s1770_s22 = scalar_lea.hbm %s2153_s1, 128  ;;  %s1774_s30 = scalar_lea.hbm %s2208_s13, 256 }
 0xd63   : > { %p1771_p4 = scmp.ne.s32.totalorder %s2153_s1, %s1770_s22  ;;  %p1775_p9 = scmp.lt.s32.totalorder %s2153_s1, %s2208_s13 }
 0xd64   : > { %p1776_p10 = scmp.lt.s32.totalorder %s1774_s30, %s1770_s22 }
 0xd65   : > { %p1772_p7 = pnand %p1771_p4, %p1940_p5 }
 0xd66   : > { %p1777_p11 = por %p1776_p10, %p1775_p9 }
 0xd67   : > { %p1773_p8 = pneg %p1772_p7 }
 0xd69   : > { %p1778_p12 = pnand %p1777_p11, %p1773_p8 }
 0xd6b   : > { %1781 = shalt.err (!%p1778_p12)
}
 0xd6c   : > { %1668 = dma.vmem_to_hbm [thread:$0]  (%p1940_p5), %s2155_s24, 128, %s2153_s1, %s1404_s29  }
 0xd6d PF: > { %p1674_p13 = scmp.ge.s32.totalorder %s1816_s28, 2  ;;  %s1429_s16 = sand.u32 1, %s1804_s25  }
 0xd6e   : > { %s1430_s2 = scalar_lea.sflag [#allocation3], %s1429_s16 }
 0xd6f   : > { %p1671_p0 = pnand %p1674_p13, %p1944_p6 }
 0xd71   : > { %p1672_p1 = pneg %p1671_p0 }
 0xd73   : > { %1799 = dma.done.wait (%p1672_p1), %s1430_s2, 128  }
 0xd74   : > { %1801 = vsyncadd (%p1672_p1), %s1430_s2, 4294967168  ;;  %p23_p2 = scmp.ge.s32.totalorder %s1927_s14, 4   ;;  %s2217_s25 = smov %s1808_s26 }
 0xd75   : > { %s2218_s26 = smov %s1812_s27  ;;  %s2219_s27 = smov %s1938_s17 }
 0xd76   : > { %s2220_s28 = smov %s1927_s14  ;;  %25 = sbr.rel (!%p23_p2) target bundleno = 7 (0x7), region = 107 }
 0xd7b   :  { %1435 = vsyncpa [#allocation3], 1 }
 0xd7c   :  { %1437 = vsyncpa [#allocation3 + $0x1], 1 }

</bundles_post_ra>
